<compile_context>
chip_gen: v7x
topology: tpu7x:2x2x1
jax: 0.10.0
libtpu: 0.0.40
codegen_flags: <defaults>
</compile_context>

<pallas_src>
import jax
import jax.numpy as jnp
from jax.experimental import pallas as pl
from jax.experimental.pallas import tpu as pltpu


_VPU_MAX_OUT_DIM = 8  # module default out_dim=1; small heads skip the MXU entirely


def _similarity_kernel_vpu(x_ref, w_ref, b_ref, o_ref):
    """out_dim <= 8 path: per-column VPU multiply + lane reduce; bias from SMEM."""
    D = x_ref.shape[-1] // 2
    out_dim = o_ref.shape[-1]
    l1 = jnp.abs(x_ref[:, pl.ds(0, D)] - x_ref[:, pl.ds(D, D)])   # (tb, D), input dtype
    for j in range(out_dim):                                       # static unroll (<= 8)
        wj = w_ref[pl.ds(j, 1), :].astype(l1.dtype)                # (1, D) row broadcast
        col = jnp.sum((l1 * wj).astype(jnp.float32), axis=-1, keepdims=True)  # f32 acc
        o_ref[:, pl.ds(j, 1)] = (col + b_ref[j]).astype(o_ref.dtype)
    # TODO(synk): activation_fn (module default None) would be fused here if configured.


def _similarity_kernel_mxu(x_ref, wt_ref, b_ref, o_ref):
    """General out_dim path: MXU matmul with (K, N) weight, f32 accumulation."""
    D = x_ref.shape[-1] // 2
    l1 = jnp.abs(x_ref[:, pl.ds(0, D)] - x_ref[:, pl.ds(D, D)])   # (tb, D)
    out = jax.lax.dot_general(
        l1, wt_ref[...],
        dimension_numbers=(((1,), (0,)), ((), ())),                # (tb,D) x (D,N)
        preferred_element_type=jnp.float32)
    out = out + b_ref[...].astype(jnp.float32)                     # (1, N) broadcast
    o_ref[...] = out.astype(o_ref.dtype)


def _vmem_budget_bytes():
    """Per-generation working-set budget, well under physical VMEM."""
    cap = 64 * 1024 * 1024
    try:
        cap = int(getattr(pltpu.get_tpu_info(), "vmem_capacity_bytes", cap))
    except Exception:
        pass
    if cap <= 64 * 1024 * 1024:
        return 28 * 1024 * 1024     # v7x: 64 MiB physical -> keep working set <= ~28 MiB
    return 80 * 1024 * 1024         # v5e/v6e: 128 MiB physical


def _pick_batch_tile(B, D, x_itemsize, reserved_bytes, x_bufs):
    """Rows per batch tile so x_bufs pipeline buffers of the (tb, 2D) x tile plus
    the resident weight/bias/output blocks fit the per-generation budget."""
    budget = _vmem_budget_bytes()
    usable = max(1 * 1024 * 1024, budget - reserved_bytes)
    row_bytes = 2 * D * x_itemsize
    rows = usable // (x_bufs * row_bytes)
    rows = max(8, (rows // 8) * 8)
    if B > 8:
        # Guarantee >= 2 grid steps so the "parallel" axis shards across v7x's 2 TCs.
        half = (((B + 1) // 2) + 7) // 8 * 8
        rows = min(rows, half)
    if rows >= B:
        return B, budget
    return rows, budget


def similarity_forward(x, weight, bias):
    """x: (B, 2, D), weight: (out_dim, D), bias: (out_dim,) -> (B, out_dim)."""
    B, two, D = x.shape
    assert two == 2
    out_dim, Dw = weight.shape
    assert Dw == D

    x_itemsize = jnp.dtype(x.dtype).itemsize
    w_itemsize = jnp.dtype(weight.dtype).itemsize

    # Fold the pair dim into lanes: contiguous reshape, no HBM copy.
    x2d = x.reshape(B, 2 * D)

    use_vpu = out_dim <= _VPU_MAX_OUT_DIM

    # Resident besides the x stream: double-buffered weight + slack for bias,
    # output blocks and internal scratch.
    reserved = 2 * out_dim * D * w_itemsize + 2 * 1024 * 1024

    x_bufs = 3
    tb, budget = _pick_batch_tile(B, D, x_itemsize, reserved, x_bufs)
    n_steps = pl.cdiv(B, tb)
    if n_steps < 3:
        x_bufs = 2                           # a 3rd buffer cannot help with <3 steps

    x_index = lambda i: (i, 0)
    if x_bufs > 2:
        try:
            x_spec = pl.BlockSpec((tb, 2 * D), x_index,
                                  pipeline_mode=pl.Buffered(x_bufs))
        except TypeError:                    # older jax without pipeline_mode kwarg
            x_spec = pl.BlockSpec((tb, 2 * D), x_index)
    else:
        x_spec = pl.BlockSpec((tb, 2 * D), x_index)

    if use_vpu:
        kernel = _similarity_kernel_vpu
        w_arg = weight                                        # (out_dim, D)
        w_spec = pl.BlockSpec((out_dim, D), lambda i: (0, 0))  # VMEM-resident
        b_arg = bias.reshape(out_dim)
        b_spec = pl.BlockSpec(memory_space=pltpu.MemorySpace.SMEM)  # scalar bias
    else:
        kernel = _similarity_kernel_mxu
        w_arg = weight.T                                      # one-time (K, N) transpose
        w_spec = pl.BlockSpec((D, out_dim), lambda i: (0, 0))
        b_arg = bias.reshape(1, out_dim)
        b_spec = pl.BlockSpec((1, out_dim), lambda i: (0, 0))

    return pl.pallas_call(
        kernel,
        out_shape=jax.ShapeDtypeStruct((B, out_dim), x.dtype),
        grid_spec=pl.GridSpec(
            grid=(n_steps,),
            in_specs=[x_spec, w_spec, b_spec],
            out_specs=pl.BlockSpec((tb, out_dim), lambda i: (i, 0)),
        ),
        compiler_params=pltpu.CompilerParams(
            dimension_semantics=("parallel",),   # megacore shards batch tiles
            vmem_limit_bytes=budget,
        ),
    )(x2d, w_arg, b_arg)


if __name__ == "__main__":
    key = jax.random.PRNGKey(0)
    k_x, k_w, k_b, k_x2, k_w2, k_b2, k_x3, k_w3, k_b3 = jax.random.split(key, 9)

    def _ref(x, w, b):
        return jnp.abs(x[:, 0, :] - x[:, 1, :]) @ w.T + b

    # 1) Default module config (out_dim=1): VPU path, single grid step.
    B, D, out_dim = 8, 32, 1
    x = jax.random.normal(k_x, (B, 2, D), dtype=jnp.float32)
    bound = 1.0 / (D ** 0.5)
    weight = jax.random.uniform(k_w, (out_dim, D), jnp.float32, -bound, bound)
    bias = jax.random.uniform(k_b, (out_dim,), jnp.float32, -bound, bound)
    out = jax.block_until_ready(similarity_forward(x, weight, bias))
    assert out.shape == (B, out_dim)
    assert jnp.allclose(out, _ref(x, weight, bias), atol=1e-5, rtol=1e-5)

    # 2) Small multi-column head (out_dim=4): VPU path, 2 grid steps, partial last tile.
    B2, D2, out_dim2 = 24, 48, 4
    x2 = jax.random.normal(k_x2, (B2, 2, D2), dtype=jnp.float32)
    bound2 = 1.0 / (D2 ** 0.5)
    weight2 = jax.random.uniform(k_w2, (out_dim2, D2), jnp.float32, -bound2, bound2)
    bias2 = jax.random.uniform(k_b2, (out_dim2,), jnp.float32, -bound2, bound2)
    out2 = jax.block_until_ready(similarity_forward(x2, weight2, bias2))
    assert out2.shape == (B2, out_dim2)
    assert jnp.allclose(out2, _ref(x2, weight2, bias2), atol=1e-5, rtol=1e-5)

    # 3) Wider head (out_dim=16): MXU path with pre-transposed (K, N) weight.
    B3, D3, out_dim3 = 32, 64, 16
    x3 = jax.random.normal(k_x3, (B3, 2, D3), dtype=jnp.float32)
    bound3 = 1.0 / (D3 ** 0.5)
    weight3 = jax.random.uniform(k_w3, (out_dim3, D3), jnp.float32, -bound3, bound3)
    bias3 = jax.random.uniform(k_b3, (out_dim3,), jnp.float32, -bound3, bound3)
    out3 = jax.block_until_ready(similarity_forward(x3, weight3, bias3))
    assert out3.shape == (B3, out_dim3)
    assert jnp.allclose(out3, _ref(x3, weight3, bias3), atol=1e-5, rtol=1e-5)

    print("KERNEL_OK")
</pallas_src>

<mosaic_0001>
module attributes {stable_mosaic.version = 11 : i64} {
  func.func @_similarity_kernel_vpu(%arg0: i32, %arg1: memref<8x64xf32, #tpu.memory_space<vmem>>, %arg2: memref<1x32xf32, #tpu.memory_space<vmem>>, %arg3: memref<1xf32, #tpu.memory_space<smem>>, %arg4: memref<8x1xf32, #tpu.memory_space<vmem>>) attributes {dimension_semantics = [#tpu.dimension_semantics<parallel>], iteration_bounds = array<i64: 1>, scalar_prefetch = 0 : i64, scratch_operands = 0 : i64, tpu.core_type = #tpu.core_type<tc>, window_params = [{transform_indices = @transform_0, window_bounds = array<i64: 8, 64>}, {pipeline_mode = #tpu.pipeline_mode<synchronous>, transform_indices = @transform_1, window_bounds = array<i64: 1, 32>}, {transform_indices = @transform_2, window_bounds = array<i64: 1>}, {transform_indices = @transform_3, window_bounds = array<i64: 8, 1>}]} {
    %c0 = arith.constant 0 : index
    %c0_0 = arith.constant 0 : index
    %0 = vector.load %arg1[%c0, %c0_0] : memref<8x64xf32, #tpu.memory_space<vmem>>, vector<8x32xf32>
    %c0_1 = arith.constant 0 : index
    %c32 = arith.constant 32 : index
    %1 = vector.load %arg1[%c0_1, %c32] : memref<8x64xf32, #tpu.memory_space<vmem>>, vector<8x32xf32>
    %2 = arith.subf %0, %1 : vector<8x32xf32>
    %3 = math.absf %2 : vector<8x32xf32>
    %c0_2 = arith.constant 0 : index
    %c0_3 = arith.constant 0 : index
    %4 = vector.load %arg2[%c0_2, %c0_3] : memref<1x32xf32, #tpu.memory_space<vmem>>, vector<1x32xf32>
    %5 = vector.broadcast %4 : vector<1x32xf32> to vector<8x32xf32>
    %6 = arith.mulf %3, %5 : vector<8x32xf32>
    %cst = arith.constant dense<0.000000e+00> : vector<8xf32>
    %7 = vector.multi_reduction <add>, %6, %cst [1] : vector<8x32xf32> to vector<8xf32>
    %8 = vector.shape_cast %7 : vector<8xf32> to vector<8x1xf32>
    %c0_4 = arith.constant 0 : index
    %9 = memref.load %arg3[%c0_4] : memref<1xf32, #tpu.memory_space<smem>>
    %10 = vector.broadcast %9 : f32 to vector<8x1xf32>
    %11 = arith.addf %8, %10 : vector<8x1xf32>
    %c0_5 = arith.constant 0 : index
    %c0_6 = arith.constant 0 : index
    %12 = vector.load %arg4[%c0_5, %c0_6] : memref<8x1xf32, #tpu.memory_space<vmem>>, vector<8x1xf32>
    tpu.vector_store %arg4[%c0_5, %c0_6], %11 {strides = array<i32>} : memref<8x1xf32, #tpu.memory_space<vmem>>, vector<8x1xf32>,
    return
  }
  func.func @transform_0(%arg0: i32) -> (i32, i32) {
    %c0_i32 = arith.constant 0 : i32
    %c0_i32_0 = arith.constant 0 : i32
    return %arg0, %c0_i32 : i32, i32
  }
  func.func @transform_1(%arg0: i32) -> (i32, i32) {
    %c0_i32 = arith.constant 0 : i32
    %c0_i32_0 = arith.constant 0 : i32
    %c0_i32_1 = arith.constant 0 : i32
    return %c0_i32, %c0_i32_0 : i32, i32
  }
  func.func @transform_2(%arg0: i32) -> i32 {
    %c0_i32 = arith.constant 0 : i32
    %c0_i32_0 = arith.constant 0 : i32
    return %c0_i32 : i32
  }
  func.func @transform_3(%arg0: i32) -> (i32, i32) {
    %c0_i32 = arith.constant 0 : i32
    %c0_i32_0 = arith.constant 0 : i32
    return %arg0, %c0_i32 : i32, i32
  }
}

</mosaic_0001>

<bundles_post_ra>
// kernel: tpu_custom_call.1
= control target key start
LH: loop header
LB: loop body
LE: loop exit
PB: predicated region body
PF: predicated region fallthrough
CT: control target
= control target key end

     0   :  { %9 = vsyncpa [#allocation4], 0  ;;  %s83_s12 = smov [#allocation3]   ;;  %s126_s0 = inlined_call_operand.hbm [shape: f32[8,64], index: 0, kind: input, shape index: {}]   ;;  %s127_s1 = inlined_call_operand.vmem [shape: f32[1,32], index: 1, kind: input, shape index: {}]   ;;  %s128_s2 = inlined_call_operand.<no memory space> [shape: f32[1], index: 2, kind: input, shape index: {}]   ;;  %s129_s3 = inlined_call_operand.vmem [shape: f32[8,1], index: 3, kind: output, shape index: {}]  }
   0x1   :  { %s16_s13 = sshll.u32 %s83_s12, 4  ;;  %s59_s16 = scalar_lea.hbm %s126_s0, 128  ;;  %s17_s13 = int_to_ptr.vmem [resolvable:$true] %s16_s13 }
   0x2   :  { %p60_p0 = scmp.ne.s32.totalorder %s126_s0, %s59_s16  ;;  %p63_p1 = scmp.lt.u32.totalorder %s59_s16, %s126_s0 }
   0x4   :  { %p65_p2 = pnand %p63_p1, %p60_p0 }
   0x6   :  { %68 = shalt.err (!%p65_p2)
}
   0x7   :  { %s69_s21 = scalar_lea.vmem %s17_s13, 128  ;;  %p74_p4 = scmp.lt.s32.totalorder %s17_s13, %s17_s13 }
   0x8   :  { %p70_p3 = scmp.ne.s32.totalorder %s17_s13, %s69_s21  ;;  %p75_p5 = scmp.lt.s32.totalorder %s69_s21, %s69_s21 }
   0xa   :  { %p76_p6 = por %p75_p5, %p74_p4 }
   0xc   :  { %p77_p7 = pnand %p76_p6, %p70_p3 }
   0xe   :  { %80 = shalt.err (!%p77_p7)
}
   0xf   :  { %19 = dma.hbm_to_vmem [thread:$0]  %s126_s0, 128, %s17_s13, [#allocation4]  }
  0x10   :  { %81 = dma.done.wait [#allocation4], 128  }
  0x11   :  { %82 = vsyncadd [#allocation4], 4294967168  ;;  %v27_v0 = vld [vmem:[#allocation3] sm:$0xff]  ;;  %s84_s24 = smov 96   ;;  %vm42_vm0 = vcmask 261120   ;;  %v47_v7 = vstv %s128_s2  ;;  %vm49_vm1 = vcmask 7168  }
  0x12   :  { %29 = vrot.lane.b32.xlu0 %v27_v0, %s84_s24  ;;  %v56_v3 = vld [vmem:[%s127_s1] ss:$0 sm:$0xff] }
  0x84   :  { %v30_v1 = vpop.permute.xlu0 %29 }
  0x85   :  { %v32_v2 = vsub.f32 %v27_v0, %v30_v1 }
  0x87   :  { %v33_v4 = vand.u32 2147483647, %v32_v2 }
  0x89   :  { %v41_v5 = vmul.f32 %v56_v3, %v33_v4 }
  0x8b   :  { %v43_v6 = vsel %vm42_vm0, %v41_v5, 0.0 }
  0x8c   :  { %44 = vadd.xlane.f32.xlu0 %v43_v6 }
 0x119   :  { %v45_v8 = vpop.xlane.xlu0 %44 }
 0x11a   :  { %v48_v9 = vadd.f32 %v47_v7, %v45_v8 }
 0x11c   :  { %50 = vst.msk [vmem:[%s129_s3] sm:$0xff] %vm49_vm1, %v48_v9 }
 0x11d   :  { %55 = vsyncpa [#allocation4], 1 }

</bundles_post_ra>
